<compile_context>
chip_gen: v6e
topology: v6e:2x2x1
jax: 0.10.0
libtpu: 0.0.40
codegen_flags: <defaults>
</compile_context>

<pallas_src>
import jax
import jax.numpy as jnp
from jax.experimental import pallas as pl
from jax.experimental.pallas import tpu as pltpu


def _round_up(n, m):
    return ((n + m - 1) // m) * m


def _transform_exr_kernel(ids_ref, x_ref, emb_ref, out_ref):
    # ids_ref: VMEM (TB, 1) int32        -- exercise ids for this batch tile
    # x_ref:   VMEM (TB, feat)           -- matching feature tile
    # emb_ref: VMEM (exer_num, pp_dim)   -- whole table, single-buffered (constant index)
    # out_ref: VMEM (TB, pp_dim + feat)
    exer_num, _ = emb_ref.shape
    tb = ids_ref.shape[0]
    ids = ids_ref[...]                                       # (TB, 1)

    # One-hot gather on the (otherwise idle) MXU:
    #   onehot (TB, exer_num) @ table (exer_num, pp_dim) -> (TB, pp_dim).
    # exer_num is gated small in the wrapper, so the one-hot intermediate, the
    # iota/compare VPU passes and the (possibly multi-pass f32) MXU work stay tiny.
    onehot = (jax.lax.broadcasted_iota(jnp.int32, (tb, exer_num), 1)
              == ids).astype(emb_ref.dtype)
    gathered = jnp.dot(onehot, emb_ref[...], preferred_element_type=jnp.float32)

    # Build the full (TB, total) tile in registers and do ONE lane-dense store
    # (avoids two masked vst.msk partial stores hitting the same lane tile).
    out_ref[...] = jnp.concatenate(
        [gathered.astype(out_ref.dtype), x_ref[...].astype(out_ref.dtype)], axis=1)


def transform_exr(emb_table, x, exer_id, *, tb=1024):
    """Pallas implementation of Transform_Exr.forward(x, exer_id)."""
    batch, feat = x.shape
    exer_num, pp_dim = emb_table.shape
    total = pp_dim + feat
    out_dtype = jnp.result_type(emb_table.dtype, x.dtype)

    emb_isize = jnp.dtype(emb_table.dtype).itemsize
    x_isize = jnp.dtype(x.dtype).itemsize
    o_isize = jnp.dtype(out_dtype).itemsize
    table_bytes = exer_num * pp_dim * emb_isize

    # Clamp ids so an out-of-range id can never read garbage (torch's nn.Embedding
    # would raise; here we deterministically pick the nearest valid row).
    ids = jnp.clip(exer_id.astype(jnp.int32), 0, exer_num - 1)

    # ---- Generation-aware VMEM budget ---------------------------------------
    try:
        vmem_cap = int(pltpu.get_tpu_info().vmem_capacity_bytes)
    except Exception:
        vmem_cap = 64 * 1024 * 1024          # conservative: v7x per-TC physical VMEM
    vmem_budget = (vmem_cap * 3) // 4        # headroom for compiler-internal scratch

    # Budget for the (tb, exer_num) f32 one-hot intermediate (keeps the gather path
    # memory-bound instead of VALU/MXU-bound for mid-size vocabularies).
    onehot_budget = 2 * 1024 * 1024
    max_tb_onehot = ((onehot_budget // (4 * exer_num)) // 8) * 8

    def tile_bytes(t):
        ids_b = t * 128 * 4                  # (t, 1) int32 block, lane-padded in VMEM
        x_b = t * feat * x_isize
        out_b = t * total * o_isize
        oh_b = t * exer_num * 4              # one-hot intermediate
        g_b = t * pp_dim * 4                 # gathered f32 intermediate
        return 2 * (ids_b + x_b + out_b) + oh_b + g_b   # ids/x/out are double-buffered

    use_pallas = (max_tb_onehot >= 8
                  and (table_bytes + tile_bytes(8)) <= vmem_budget)
    if not use_pallas:
        # Vocabulary too large for a VMEM-resident table / one-hot gather.
        # TODO(synk): implement a Pallas manual row-gather here (table in HBM via
        # memory_space=pl.ANY, scalar-prefetched ids, a small ring of
        # pltpu.make_async_copy row fetches overlapped with the x copy + fused store).
        return jnp.concatenate(
            [emb_table[ids].astype(out_dtype), x.astype(out_dtype)], axis=1)

    # ---- Batch tile selection ------------------------------------------------
    padded8 = _round_up(max(batch, 1), 8)
    tb = max(8, min((tb // 8) * 8, padded8))
    tb = min(tb, max(8, max_tb_onehot))
    while tb > 8 and table_bytes + tile_bytes(tb) > vmem_budget:
        tb = max(8, ((tb // 2) // 8) * 8)

    grid = (pl.cdiv(batch, tb),)

    # No padding of x or the output: Pallas clamps the partial tail block's DMAs to
    # the array bounds; garbage rows read in the tail tile only land in masked rows.
    ids2 = ids.reshape(batch, 1)

    cost = pl.CostEstimate(
        flops=2 * batch * exer_num * pp_dim,                 # one-hot matmul
        transcendentals=0,
        bytes_accessed=(batch * 4                            # ids (int32)
                        + table_bytes
                        + batch * feat * x_isize
                        + batch * total * o_isize),
    )

    # TODO(synk): on v7x, try dimension_semantics=(pltpu.CORE_PARALLEL,) (or a
    # core_map batch split) and verify with a trace that both TensorCores engage;
    # plain "parallel" does not guarantee 2-TC sharding.
    out = pl.pallas_call(
        _transform_exr_kernel,
        out_shape=jax.ShapeDtypeStruct((batch, total), out_dtype),
        grid=grid,
        in_specs=[
            # Per-tile exercise ids. Kept as a (tb, 1) block: a lane-dense (1, tb)
            # layout would require an in-kernel cross-lane relayout before the
            # one-hot compare; the (tb, 1) source is contiguous in HBM and tiny.
            pl.BlockSpec((tb, 1), lambda i: (i, 0)),
            # Matching batch tile of x.
            pl.BlockSpec((tb, feat), lambda i: (i, 0)),
            # Whole embedding table, single-buffered VMEM resident (constant index
            # => no double-buffering, half the footprint of a blocked spec).
            pl.BlockSpec(memory_space=pltpu.MemorySpace.VMEM),
        ],
        out_specs=pl.BlockSpec((tb, total), lambda i: (i, 0)),
        compiler_params=pltpu.CompilerParams(
            dimension_semantics=("parallel",),
            vmem_limit_bytes=int(vmem_budget)),
        cost_estimate=cost,
    )(ids2, x, emb_table)

    return out


if __name__ == "__main__":
    # Deterministic, small shapes consistent with the module.
    exer_num = 20
    pp_dim = 16
    batch = 8
    feat = 32

    key = jax.random.PRNGKey(0)
    k_emb, k_x, k_id = jax.random.split(key, 3)

    # Deterministic "parameter" init for nn.Embedding(exer_num, pp_dim).
    emb_table = jax.random.normal(k_emb, (exer_num, pp_dim), dtype=jnp.float32)
    x = jax.random.normal(k_x, (batch, feat), dtype=jnp.float32)
    exer_id = jax.random.randint(k_id, (batch,), 0, exer_num, dtype=jnp.int32)

    out = transform_exr(emb_table, x, exer_id)
    out = jax.block_until_ready(out)

    # Reference check (pure JAX).
    ref = jnp.concatenate([emb_table[exer_id], x], axis=1)
    assert out.shape == (batch, pp_dim + feat)
    assert jnp.allclose(out, ref, atol=1e-5), "mismatch vs reference"

    print("KERNEL_OK")
</pallas_src>

<mosaic_0001>
module attributes {stable_mosaic.version = 11 : i64} {
  func.func @_transform_exr_kernel(%arg0: i32, %arg1: memref<8x1xi32, #tpu.memory_space<vmem>>, %arg2: memref<8x32xf32, #tpu.memory_space<vmem>>, %arg3: memref<20x16xf32, #tpu.memory_space<vmem>>, %arg4: memref<8x48xf32, #tpu.memory_space<vmem>>) attributes {dimension_semantics = [#tpu.dimension_semantics<parallel>], iteration_bounds = array<i64: 1>, scalar_prefetch = 0 : i64, scratch_operands = 0 : i64, tpu.core_type = #tpu.core_type<tc>, window_params = [{transform_indices = @transform_0, window_bounds = array<i64: 8, 1>}, {transform_indices = @transform_1, window_bounds = array<i64: 8, 32>}, {pipeline_mode = #tpu.pipeline_mode<synchronous>, transform_indices = @transform_2, window_bounds = array<i64: 20, 16>}, {transform_indices = @transform_3, window_bounds = array<i64: 8, 48>}]} {
    %c0 = arith.constant 0 : index
    %c0_0 = arith.constant 0 : index
    %0 = vector.load %arg1[%c0, %c0_0] : memref<8x1xi32, #tpu.memory_space<vmem>>, vector<8x1xi32>
    %1 = tpu.iota {dimensions = array<i32: 1>} : vector<8x20xi32>
    %2 = vector.broadcast %0 : vector<8x1xi32> to vector<8x20xi32>
    %3 = arith.cmpi eq, %1, %2 : vector<8x20xi32>
    %4 = arith.extui %3 : vector<8x20xi1> to vector<8x20xi32>
    %5 = arith.sitofp %4 : vector<8x20xi32> to vector<8x20xf32>
    %c0_1 = arith.constant 0 : index
    %c0_2 = arith.constant 0 : index
    %6 = vector.load %arg3[%c0_1, %c0_2] : memref<20x16xf32, #tpu.memory_space<vmem>>, vector<20x16xf32>
    %cst = arith.constant dense<0.000000e+00> : vector<8x16xf32>
    %7 = tpu.matmul %5, %6, %cst {dimension_numbers = #tpu.dot_dimension_numbers<[1], [0], [0], [1], [0, 0, 1, 1], [], []>} : vector<8x20xf32>, vector<20x16xf32>, vector<8x16xf32> -> vector<8x16xf32>
    %c0_3 = arith.constant 0 : index
    %c0_4 = arith.constant 0 : index
    %8 = vector.load %arg2[%c0_3, %c0_4] : memref<8x32xf32, #tpu.memory_space<vmem>>, vector<8x32xf32>
    %9 = tpu.concatenate %7, %8 in 1 : vector<8x16xf32>, vector<8x32xf32> -> vector<8x48xf32>
    %c0_5 = arith.constant 0 : index
    %c0_6 = arith.constant 0 : index
    %10 = vector.load %arg4[%c0_5, %c0_6] : memref<8x48xf32, #tpu.memory_space<vmem>>, vector<8x48xf32>
    tpu.vector_store %arg4[%c0_5, %c0_6], %9 {strides = array<i32>} : memref<8x48xf32, #tpu.memory_space<vmem>>, vector<8x48xf32>,
    return
  }
  func.func @transform_0(%arg0: i32) -> (i32, i32) {
    %c0_i32 = arith.constant 0 : i32
    %c0_i32_0 = arith.constant 0 : i32
    return %arg0, %c0_i32 : i32, i32
  }
  func.func @transform_1(%arg0: i32) -> (i32, i32) {
    %c0_i32 = arith.constant 0 : i32
    %c0_i32_0 = arith.constant 0 : i32
    return %arg0, %c0_i32 : i32, i32
  }
  func.func @transform_2(%arg0: i32) -> (i32, i32) {
    %c0_i32 = arith.constant 0 : i32
    %c0_i32_0 = arith.constant 0 : i32
    %c0_i32_1 = arith.constant 0 : i32
    return %c0_i32, %c0_i32_0 : i32, i32
  }
  func.func @transform_3(%arg0: i32) -> (i32, i32) {
    %c0_i32 = arith.constant 0 : i32
    %c0_i32_0 = arith.constant 0 : i32
    return %arg0, %c0_i32 : i32, i32
  }
}

</mosaic_0001>

<bundles_post_ra>
// kernel: tpu_custom_call.1
= control target key start
LH: loop header
LB: loop body
LE: loop exit
PB: predicated region body
PF: predicated region fallthrough
CT: control target
= control target key end

     0   :  { %vm31_vm0 = vcmask 1043456   ;;  %v172_v2 = vmov 0   ;;  %v173_v3 = vmov 0.0   ;;  %s215_s0 = inlined_call_operand.vmem [shape: s32[8,1], index: 0, kind: input, shape index: {}]   ;;  %s216_s1 = inlined_call_operand.vmem [shape: f32[8,32], index: 1, kind: input, shape index: {}]   ;;  %s217_s2 = inlined_call_operand.vmem [shape: f32[20,16], index: 2, kind: input, shape index: {}]   ;;  %s218_s3 = inlined_call_operand.hbm [shape: f32[8,48], index: 3, kind: output, shape index: {}]  }
   0x1   :  { %v15_v0 = vld [vmem:[%s215_s0] sm:$0xff]  ;;  %v26_v1 = vld [vmem:[%s217_s2 + $0x10] sm:$0xf]  ;;  %149 = vset.pattern.permute.xlu0 %v172_v2  ;;  %135 = vmatprep.subr.mxu0 %v173_v3  ;;  %v25_v4 = vld [vmem:[%s217_s2 + $0x8] sm:$0xff] }
   0x2   :  { %19 = vperm.xlu0 %149, %v15_v0   ;;  %136 = vmatpush3.msk.msra.mxu0 %vm31_vm0, %v26_v1 }
   0x3   :  { %8 = vsyncpa [#allocation3], 0  ;;  %137 = vmatprep.subr.mxu0 %v173_v3  ;;  %v24_v5 = vld [vmem:[%s217_s2] sm:$0xff]  ;;  %vm174_vm1 = vmmov 0   ;;  %s175_s21 = smov 16   ;;  %v16_v7 = vlaneseq  ;;  %vm27_vm2 = vcmask 162816  }
   0x4   :  { %141 = vmatprep.mubr.msk.f32.mxu0 %vm174_vm1, %v173_v3  ;;  %v105_v6 = vld [vmem:[%s216_s1] sm:$0xff]  ;;  %138 = vmatpush3.msra.mxu0 %v25_v4  ;;  %s176_s22 = smov [#allocation2]   ;;  %vm110_vm4 = vcmask 130048   ;;  %vm112_vm5 = vcmask 392192  }
   0x5   :  { %139 = vmatprep.subr.mxu0 %v173_v3  ;;  %v17_v8 = vand.u32 127, %v16_v7  ;;  %s120_s2 = sshll.u32 %s176_s22, 4  ;;  %s121_s2 = int_to_ptr.vmem [resolvable:$true] %s120_s2 }
   0x6   :  { %140 = vmatpush3.msra.mxu0 %v24_v5  ;;  %107 = vrot.lane.b32.xlu0 %v105_v6, %s175_s21  ;;  %s150_s1 = scalar_lea.vmem %s121_s2, 128  ;;  %p155_p1 = scmp.lt.s32.totalorder %s121_s2, %s121_s2 }
   0x7   :  { %p151_p0 = scmp.ne.s32.totalorder %s121_s2, %s150_s1  ;;  %p156_p2 = scmp.lt.s32.totalorder %s150_s1, %s150_s1 }
   0x9   :  { %p157_p3 = por %p156_p2, %p155_p1 }
   0xb   :  { %p158_p4 = pnand %p157_p3, %p151_p0 }
  0x7d   :  { %v20_v9 = vpop.permute.xlu0 %19 }
  0x7e   :  { %vm21_vm3 = vcmp.eq.s32.totalorder %v17_v8, %v20_v9 }
  0x7f   :  { %v128_v10 = vsel %vm21_vm3, 1.0, %v173_v3 }
  0x80   :  { %142 = vmatmul.mubr.msk.f32.vlgmr.msra.gmra.mxu0 %vm27_vm2, %v128_v10 }
  0x81   :  { %v108_v11 = vpop.permute.xlu0 %107 }
 0x140   :  { %v101_v12 = vpop.f32.mrf.mxu0 }
 0x141   :  { %v111_v13 = vsel %vm110_vm4, %v101_v12, %v108_v11 }
 0x142   :  { %v143_v14 = vpop.f32.mrf.mxu0  ;;  %113 = vst.msk [vmem:[#allocation2] sm:$0xff] %vm112_vm5, %v111_v13 }
 0x143   :  { %161 = shalt.err (!%p158_p4)
}
 0x144   :  { %123 = dma.vmem_to_hbm [thread:$0]  %s121_s2, 128, %s218_s3, [#allocation3]  }
 0x145   :  { %170 = dma.done.wait [#allocation3], 128  }
 0x146   :  { %171 = vsyncadd [#allocation3], 4294967168 }
 0x147   :  { %127 = vsyncpa [#allocation3], 1 }

</bundles_post_ra>
